<compile_context>
chip_gen: v7x
topology: tpu7x:2x2x1
jax: 0.10.0
libtpu: 0.0.40
codegen_flags: <defaults>
</compile_context>

<pallas_src>
import functools

import jax
import jax.numpy as jnp
import numpy as np
from jax.experimental import pallas as pl
from jax.experimental.pallas import tpu as pltpu


def attention_critic_kernel(agent_id, hidden_dim, n_agents,
                            inps_ref,      # (A, Din, BT)  bf16
                            gdiff_ref,     # (A, BT)       f32  (g1-g0+b1-b0)/tau
                            fc1_wt_ref,    # (H, Din)      bf16
                            fc1_b_ref,     # (H, 1)        f32
                            fused_wt_ref,  # (3H, H)       bf16 [keyT; valT; queryT/sqrt(H)]
                            val_b_ref,     # (H, 1)        f32
                            hard_ws_ref,   # (H, 1)        f32  self  half of (w1-w0)/tau
                            hard_wo_ref,   # (H, 1)        f32  other half of (w1-w0)/tau
                            fc2a_t_ref,    # (H, H)        bf16 fc2 self-half (transposed)
                            fc2b_t_ref,    # (H, H)        bf16 fc2 others-half (transposed)
                            fc2_b_ref,     # (H, 1)        f32
                            qout_w_ref,    # (H, 1)        f32
                            qout_b_ref,    # (1, 1)        f32
                            q_ref):        # (1, BT)       f32
    A, H = n_agents, hidden_dim
    f32, bf16 = jnp.float32, jnp.bfloat16

    fc1_wt = fc1_wt_ref[...]
    fc1_b = fc1_b_ref[...]
    fused_wt = fused_wt_ref[...]
    val_b = val_b_ref[...]
    hard_ws = hard_ws_ref[...]
    hard_wo = hard_wo_ref[...]
    gdiff = gdiff_ref[...]                                   # (A, BT)

    # ---- per-agent fc1 + fused key/value/query projection.  A is small and
    #      static -> unrolled python loop; every matmul is bf16 on the MXU with
    #      f32 accumulation and the batch on the 128-lane axis. ---------------
    enc, keys, vals, hard_o = [], [], [], []
    query = None
    for a in range(A):
        x_a = inps_ref[a]                                    # (Din, BT) bf16
        oa = jnp.maximum(
            jnp.dot(fc1_wt, x_a, preferred_element_type=f32) + fc1_b, 0.0)
        enc.append(oa)                                       # (H, BT) f32
        proj = jnp.dot(fused_wt, oa.astype(bf16),
                       preferred_element_type=f32)           # (3H, BT) f32
        keys.append(proj[0:H])                               # aligned sublane slices
        vals.append(jnp.maximum(proj[H:2 * H] + val_b, 0.0))
        if a == agent_id:
            query = proj[2 * H:3 * H]                        # already scaled by 1/sqrt(H)
        # hard-attention "other agent" logit half, kept f32 (1/tau amplified).
        hard_o.append(jnp.sum(oa * hard_wo, axis=0, keepdims=True))   # (1, BT)
    hard_self = jnp.sum(enc[agent_id] * hard_ws, axis=0, keepdims=True)

    # ---- soft attention over the other agents (self excluded statically) ----
    others = [a for a in range(A) if a != agent_id]
    logits = [jnp.sum(query * keys[a], axis=0, keepdims=True) for a in others]
    m = logits[0]
    for l in logits[1:]:
        m = jnp.maximum(m, l)
    exps = [jnp.exp(l - m) for l in logits]
    denom = exps[0]
    for e in exps[1:]:
        denom = denom + e
    inv_denom = pl.reciprocal(denom, approx=True)            # EUP slot

    # ---- hard gate (2-class gumbel-softmax == stable sigmoid of the logit
    #      difference), combine with soft weights, reduce over other agents. --
    oav = None                                               # (H, BT)
    for idx, a in enumerate(others):
        z = hard_o[a] + hard_self + gdiff[a:a + 1, :]        # (1, BT)
        ezn = jnp.exp(-jnp.abs(z))
        gate = jnp.where(z >= 0.0, 1.0, ezn) / (1.0 + ezn)   # exact divide (review note)
        w = exps[idx] * inv_denom * gate                     # (1, BT)
        contrib = vals[a] * w                                # (H, BT)
        oav = contrib if oav is None else oav + contrib

    # ---- head: fc2 as split halves (no concat) + ReLU; q_out as a VPU
    #      multiply + sublane reduce -> lane-dense (1, BT) store. -------------
    x2 = jnp.maximum(
        jnp.dot(fc2a_t_ref[...], enc[agent_id].astype(bf16),
                preferred_element_type=f32)
        + jnp.dot(fc2b_t_ref[...], oav.astype(bf16),
                  preferred_element_type=f32)
        + fc2_b_ref[...], 0.0)                               # (H, BT)
    q_ref[...] = (jnp.sum(x2 * qout_w_ref[...], axis=0, keepdims=True)
                  + qout_b_ref[...])


def _choose_batch_tiling(batch, target_bt=2048):
    """Return (padded_batch, batch_tile).

    Large tiles amortize the ~0.35us per-grid-step pipeline cost; tiles stay
    multiples of 128 so the (1, BT) output row is lane-dense, and the grid is
    made even when the batch is big enough that v7x's two TensorCores each get
    a full-sized tile.  Small / awkward batches use a single full-array tile
    (always a legal block shape)."""
    if batch % 128 != 0 and batch <= max(target_bt, 128):
        return batch, batch
    padded = pl.cdiv(batch, 128) * 128
    n_tiles = max(1, int(round(padded / target_bt)))
    if n_tiles > 1 and n_tiles % 2:
        n_tiles += 1                          # even grid -> balanced megacore split
    while (padded // 128) % n_tiles:          # every tile stays a multiple of 128
        n_tiles -= 1
    return padded, padded // n_tiles


def attention_critic_forward(state_cat, act_cat, gumbel, params, *,
                             agent_id, max_action, hidden_dim, tau=0.01):
    """state_cat: (A,B,obs); act_cat: (A,B,act); gumbel: (A,B,2) Gumbel(0,1) noise."""
    A, B, _ = state_cat.shape
    H = hidden_dim
    assert 0 <= agent_id < A
    inv_tau = 1.0 / float(tau)
    inv_sqrt_h = float(H) ** -0.5
    f32, bf16 = jnp.float32, jnp.bfloat16

    inps = jnp.concatenate([state_cat, act_cat / max_action], axis=-1)
    Din = inps.shape[-1]
    # Feature-major / batch-on-lanes layout; bf16 halves the dominant HBM read.
    inps_fm = jnp.transpose(inps, (0, 2, 1)).astype(bf16)          # (A, Din, B)

    # 2-class gumbel-softmax == sigmoid((logit diff + noise diff)/tau):
    # precompute the logit-difference weight halves, pre-scaled by 1/tau.
    w_diff = params["hard_w"][:, 1] - params["hard_w"][:, 0]       # (2H,)
    b_diff = params["hard_b"][0, 1] - params["hard_b"][0, 0]
    hard_ws = (w_diff[:H] * inv_tau).reshape(H, 1).astype(f32)     # self half
    hard_wo = (w_diff[H:] * inv_tau).reshape(H, 1).astype(f32)     # others half
    gdiff = (((gumbel[..., 1] - gumbel[..., 0]) + b_diff)
             * inv_tau).astype(f32)                                # (A, B); self row unused

    # Fused (transposed) key | value | scaled-query projection: (3H, H) bf16.
    fused_wt = jnp.concatenate(
        [params["key_w"].T, params["val_w"].T,
         (params["query_w"] * inv_sqrt_h).T], axis=0).astype(bf16)

    weights = [
        params["fc1_w"].T.astype(bf16),                  # (H, Din)
        params["fc1_b"].reshape(H, 1).astype(f32),
        fused_wt,                                        # (3H, H)
        params["val_b"].reshape(H, 1).astype(f32),
        hard_ws, hard_wo,
        params["fc2_w"][:H].T.astype(bf16),              # fc2 self half
        params["fc2_w"][H:].T.astype(bf16),              # fc2 others half
        params["fc2_b"].reshape(H, 1).astype(f32),
        params["qout_w"].reshape(H, 1).astype(f32),
        params["qout_b"].reshape(1, 1).astype(f32),
    ]

    Bp, BT = _choose_batch_tiling(B)
    if Bp != B:                      # pad batch to a lane multiple, slice later
        inps_fm = jnp.pad(inps_fm, ((0, 0), (0, 0), (0, Bp - B)))
        gdiff = jnp.pad(gdiff, ((0, 0), (0, Bp - B)))

    in_specs = [
        pl.BlockSpec((A, Din, BT), lambda i: (0, 0, i)),           # inputs (bf16)
        pl.BlockSpec((A, BT), lambda i: (0, i)),                   # scaled gumbel diff
    ] + [
        pl.BlockSpec(w.shape, lambda i, _n=w.ndim: (0,) * _n)      # weights (<32 KiB
        for w in weights                                           # total) ride along
    ]
    out_spec = pl.BlockSpec((1, BT), lambda i: (0, i))             # lane-dense q row

    kernel = functools.partial(attention_critic_kernel, agent_id, H, A)
    q_row = pl.pallas_call(
        kernel,
        out_shape=jax.ShapeDtypeStruct((1, Bp), jnp.float32),
        grid_spec=pltpu.PrefetchScalarGridSpec(
            num_scalar_prefetch=0,
            grid=(Bp // BT,),
            in_specs=in_specs,
            out_specs=out_spec),
        compiler_params=pltpu.CompilerParams(
            dimension_semantics=("parallel",),
            vmem_limit_bytes=32 * 1024 * 1024),
    )(inps_fm, gdiff, *weights)

    return q_row[:, :B].reshape(B, 1)


def attention_critic_reference(state_cat, act_cat, gumbel, params, *,
                               agent_id, max_action, hidden_dim, tau=0.01):
    """Pure-JAX mirror of the PyTorch forward (correctness check)."""
    H = hidden_dim
    A = state_cat.shape[0]
    inps = jnp.concatenate([state_cat, act_cat / max_action], axis=-1)
    oa = jax.nn.relu(inps @ params["fc1_w"] + params["fc1_b"])        # (A,B,H)
    enc_self = oa[agent_id]
    idx = np.array([i for i in range(A) if i != agent_id])
    others = oa[idx]                                                  # (A-1,B,H)
    self_rep = jnp.broadcast_to(enc_self[None], others.shape)
    hard_logits = (jnp.concatenate([self_rep, others], axis=-1)
                   @ params["hard_w"] + params["hard_b"])             # (A-1,B,2)
    hard = jax.nn.softmax((hard_logits + gumbel[idx]) / tau,
                          axis=-1)[..., 1:2]                          # (A-1,B,1)
    keys = others @ params["key_w"]
    vals = jax.nn.relu(others @ params["val_w"] + params["val_b"])
    query = enc_self @ params["query_w"]
    logits = jnp.sum(query[None] * keys, axis=-1,
                     keepdims=True) / np.sqrt(float(H))
    attw = jax.nn.softmax(logits, axis=0)
    oav = jnp.sum(vals * attw * hard, axis=0)                         # (B,H)
    x2 = jax.nn.relu(jnp.concatenate([enc_self, oav], axis=-1)
                     @ params["fc2_w"] + params["fc2_b"])
    return x2 @ params["qout_w"] + params["qout_b"]                   # (B,1)


def init_params(key, din, hidden):
    """Deterministic synthetic init (PyTorch-Linear-like uniform fan-in bound)."""
    ks = jax.random.split(key, 12)

    def lin(k, fan_in, shape):
        bound = 1.0 / float(fan_in) ** 0.5
        return jax.random.uniform(k, shape, jnp.float32, -bound, bound)

    return dict(
        fc1_w=lin(ks[0], din, (din, hidden)),
        fc1_b=lin(ks[1], din, (1, hidden)),
        hard_w=lin(ks[2], 2 * hidden, (2 * hidden, 2)),
        hard_b=lin(ks[3], 2 * hidden, (1, 2)),
        key_w=lin(ks[4], hidden, (hidden, hidden)),       # bias=False
        query_w=lin(ks[5], hidden, (hidden, hidden)),     # bias=False
        val_w=lin(ks[6], hidden, (hidden, hidden)),
        val_b=lin(ks[7], hidden, (1, hidden)),
        fc2_w=lin(ks[8], 2 * hidden, (2 * hidden, hidden)),
        fc2_b=lin(ks[9], 2 * hidden, (1, hidden)),
        qout_w=lin(ks[10], hidden, (hidden, 1)),
        qout_b=lin(ks[11], hidden, (1, 1)),
    )


if __name__ == "__main__":
    key = jax.random.PRNGKey(0)
    n_agents, agent_id = 4, 1
    obs_dim, act_dim = 12, 4
    hidden_dim = 32
    max_action = 1.0
    tau = 0.01

    k1, k2, k3, _ = jax.random.split(key, 4)
    params = init_params(k3, obs_dim + act_dim, hidden_dim)

    def make_inputs(batch, kk):
        ka, kb, kc = jax.random.split(kk, 3)
        state = jax.random.normal(ka, (n_agents, batch, obs_dim), jnp.float32)
        act = jax.random.normal(kb, (n_agents, batch, act_dim), jnp.float32)
        # Gumbel noise for F.gumbel_softmax (stochastic in torch; sampled here).
        u = jax.random.uniform(kc, (n_agents, batch, 2), jnp.float32,
                               1e-6, 1.0 - 1e-6)
        return state, act, -jnp.log(-jnp.log(u))

    def check(batch, kk):
        state_cat, act_cat, gumbel = make_inputs(batch, kk)
        q_value = attention_critic_forward(
            state_cat, act_cat, gumbel, params, agent_id=agent_id,
            max_action=max_action, hidden_dim=hidden_dim, tau=tau)
        jax.block_until_ready(q_value)
        assert q_value.shape == (batch, 1)
        q_expected = attention_critic_reference(
            state_cat, act_cat, gumbel, params, agent_id=agent_id,
            max_action=max_action, hidden_dim=hidden_dim, tau=tau)
        np.testing.assert_allclose(np.asarray(q_value), np.asarray(q_expected),
                                   rtol=5e-2, atol=5e-2)

    # Small batch: single full-array tile, grid of 1.
    check(8, k1)
    # Larger batch: exercises the padded, even multi-tile ("parallel") path.
    check(5000, k2)

    print("KERNEL_OK")
</pallas_src>

<mosaic_0001>
module attributes {stable_mosaic.version = 11 : i64} {
  func.func @attention_critic_kernel(%arg0: i32, %arg1: memref<4x16x8xbf16, #tpu.memory_space<vmem>>, %arg2: memref<4x8xf32, #tpu.memory_space<vmem>>, %arg3: memref<32x16xbf16, #tpu.memory_space<vmem>>, %arg4: memref<32x1xf32, #tpu.memory_space<vmem>>, %arg5: memref<96x32xbf16, #tpu.memory_space<vmem>>, %arg6: memref<32x1xf32, #tpu.memory_space<vmem>>, %arg7: memref<32x1xf32, #tpu.memory_space<vmem>>, %arg8: memref<32x1xf32, #tpu.memory_space<vmem>>, %arg9: memref<32x32xbf16, #tpu.memory_space<vmem>>, %arg10: memref<32x32xbf16, #tpu.memory_space<vmem>>, %arg11: memref<32x1xf32, #tpu.memory_space<vmem>>, %arg12: memref<32x1xf32, #tpu.memory_space<vmem>>, %arg13: memref<1x1xf32, #tpu.memory_space<vmem>>, %arg14: memref<1x8xf32, #tpu.memory_space<vmem>>) attributes {dimension_semantics = [#tpu.dimension_semantics<parallel>], iteration_bounds = array<i64: 1>, scalar_prefetch = 0 : i64, scratch_operands = 0 : i64, tpu.core_type = #tpu.core_type<tc>, window_params = [{transform_indices = @transform_0, window_bounds = array<i64: 4, 16, 8>}, {transform_indices = @transform_1, window_bounds = array<i64: 4, 8>}, {pipeline_mode = #tpu.pipeline_mode<synchronous>, transform_indices = @transform_2, window_bounds = array<i64: 32, 16>}, {pipeline_mode = #tpu.pipeline_mode<synchronous>, transform_indices = @transform_3, window_bounds = array<i64: 32, 1>}, {pipeline_mode = #tpu.pipeline_mode<synchronous>, transform_indices = @transform_4, window_bounds = array<i64: 96, 32>}, {pipeline_mode = #tpu.pipeline_mode<synchronous>, transform_indices = @transform_5, window_bounds = array<i64: 32, 1>}, {pipeline_mode = #tpu.pipeline_mode<synchronous>, transform_indices = @transform_6, window_bounds = array<i64: 32, 1>}, {pipeline_mode = #tpu.pipeline_mode<synchronous>, transform_indices = @transform_7, window_bounds = array<i64: 32, 1>}, {pipeline_mode = #tpu.pipeline_mode<synchronous>, transform_indices = @transform_8, window_bounds = array<i64: 32, 32>}, {pipeline_mode = #tpu.pipeline_mode<synchronous>, transform_indices = @transform_9, window_bounds = array<i64: 32, 32>}, {pipeline_mode = #tpu.pipeline_mode<synchronous>, transform_indices = @transform_10, window_bounds = array<i64: 32, 1>}, {pipeline_mode = #tpu.pipeline_mode<synchronous>, transform_indices = @transform_11, window_bounds = array<i64: 32, 1>}, {pipeline_mode = #tpu.pipeline_mode<synchronous>, transform_indices = @transform_12, window_bounds = array<i64: 1, 1>}, {transform_indices = @transform_13, window_bounds = array<i64: 1, 8>}]} {
    %c0 = arith.constant 0 : index
    %c0_0 = arith.constant 0 : index
    %0 = vector.load %arg3[%c0, %c0_0] : memref<32x16xbf16, #tpu.memory_space<vmem>>, vector<32x16xbf16>
    %c0_1 = arith.constant 0 : index
    %c0_2 = arith.constant 0 : index
    %1 = vector.load %arg4[%c0_1, %c0_2] : memref<32x1xf32, #tpu.memory_space<vmem>>, vector<32x1xf32>
    %c0_3 = arith.constant 0 : index
    %c0_4 = arith.constant 0 : index
    %2 = vector.load %arg5[%c0_3, %c0_4] : memref<96x32xbf16, #tpu.memory_space<vmem>>, vector<96x32xbf16>
    %c0_5 = arith.constant 0 : index
    %c0_6 = arith.constant 0 : index
    %3 = vector.load %arg6[%c0_5, %c0_6] : memref<32x1xf32, #tpu.memory_space<vmem>>, vector<32x1xf32>
    %c0_7 = arith.constant 0 : index
    %c0_8 = arith.constant 0 : index
    %4 = vector.load %arg7[%c0_7, %c0_8] : memref<32x1xf32, #tpu.memory_space<vmem>>, vector<32x1xf32>
    %c0_9 = arith.constant 0 : index
    %c0_10 = arith.constant 0 : index
    %5 = vector.load %arg8[%c0_9, %c0_10] : memref<32x1xf32, #tpu.memory_space<vmem>>, vector<32x1xf32>
    %c0_11 = arith.constant 0 : index
    %c0_12 = arith.constant 0 : index
    %6 = vector.load %arg2[%c0_11, %c0_12] : memref<4x8xf32, #tpu.memory_space<vmem>>, vector<4x8xf32>
    %c0_13 = arith.constant 0 : index
    %c0_14 = arith.constant 0 : index
    %c0_15 = arith.constant 0 : index
    %7 = vector.load %arg1[%c0_13, %c0_14, %c0_15] : memref<4x16x8xbf16, #tpu.memory_space<vmem>>, vector<1x16x8xbf16>
    %8 = vector.shape_cast %7 : vector<1x16x8xbf16> to vector<16x8xbf16>
    %cst = arith.constant dense<0.000000e+00> : vector<32x8xf32>
    %9 = tpu.matmul %0, %8, %cst {dimension_numbers = #tpu.dot_dimension_numbers<[1], [0], [0], [1], [0, 0, 1, 1], [], []>} : vector<32x16xbf16>, vector<16x8xbf16>, vector<32x8xf32> -> vector<32x8xf32>
    %10 = vector.broadcast %1 : vector<32x1xf32> to vector<32x8xf32>
    %11 = arith.addf %9, %10 : vector<32x8xf32>
    %cst_16 = arith.constant 0.000000e+00 : f32
    %12 = vector.broadcast %cst_16 : f32 to vector<32x8xf32>
    %13 = arith.maximumf %11, %12 : vector<32x8xf32>
    %14 = arith.truncf %13 : vector<32x8xf32> to vector<32x8xbf16>
    %cst_17 = arith.constant dense<0.000000e+00> : vector<96x8xf32>
    %15 = tpu.matmul %2, %14, %cst_17 {dimension_numbers = #tpu.dot_dimension_numbers<[1], [0], [0], [1], [0, 0, 1, 1], [], []>} : vector<96x32xbf16>, vector<32x8xbf16>, vector<96x8xf32> -> vector<96x8xf32>
    %16 = vector.extract_strided_slice %15 {offsets = [0, 0], sizes = [32, 8], strides = [1, 1]} : vector<96x8xf32> to vector<32x8xf32>
    %17 = vector.extract_strided_slice %15 {offsets = [32, 0], sizes = [32, 8], strides = [1, 1]} : vector<96x8xf32> to vector<32x8xf32>
    %18 = vector.broadcast %3 : vector<32x1xf32> to vector<32x8xf32>
    %19 = arith.addf %17, %18 : vector<32x8xf32>
    %cst_18 = arith.constant 0.000000e+00 : f32
    %20 = vector.broadcast %cst_18 : f32 to vector<32x8xf32>
    %21 = arith.maximumf %19, %20 : vector<32x8xf32>
    %22 = vector.broadcast %5 : vector<32x1xf32> to vector<32x8xf32>
    %23 = arith.mulf %13, %22 : vector<32x8xf32>
    %cst_19 = arith.constant dense<0.000000e+00> : vector<8xf32>
    %24 = vector.multi_reduction <add>, %23, %cst_19 [0] : vector<32x8xf32> to vector<8xf32>
    %25 = vector.shape_cast %24 : vector<8xf32> to vector<1x8xf32>
    %c1 = arith.constant 1 : index
    %c0_20 = arith.constant 0 : index
    %c0_21 = arith.constant 0 : index
    %26 = vector.load %arg1[%c1, %c0_20, %c0_21] : memref<4x16x8xbf16, #tpu.memory_space<vmem>>, vector<1x16x8xbf16>
    %27 = vector.shape_cast %26 : vector<1x16x8xbf16> to vector<16x8xbf16>
    %cst_22 = arith.constant dense<0.000000e+00> : vector<32x8xf32>
    %28 = tpu.matmul %0, %27, %cst_22 {dimension_numbers = #tpu.dot_dimension_numbers<[1], [0], [0], [1], [0, 0, 1, 1], [], []>} : vector<32x16xbf16>, vector<16x8xbf16>, vector<32x8xf32> -> vector<32x8xf32>
    %29 = vector.broadcast %1 : vector<32x1xf32> to vector<32x8xf32>
    %30 = arith.addf %28, %29 : vector<32x8xf32>
    %cst_23 = arith.constant 0.000000e+00 : f32
    %31 = vector.broadcast %cst_23 : f32 to vector<32x8xf32>
    %32 = arith.maximumf %30, %31 : vector<32x8xf32>
    %33 = arith.truncf %32 : vector<32x8xf32> to vector<32x8xbf16>
    %cst_24 = arith.constant dense<0.000000e+00> : vector<96x8xf32>
    %34 = tpu.matmul %2, %33, %cst_24 {dimension_numbers = #tpu.dot_dimension_numbers<[1], [0], [0], [1], [0, 0, 1, 1], [], []>} : vector<96x32xbf16>, vector<32x8xbf16>, vector<96x8xf32> -> vector<96x8xf32>
    %35 = vector.extract_strided_slice %34 {offsets = [64, 0], sizes = [32, 8], strides = [1, 1]} : vector<96x8xf32> to vector<32x8xf32>
    %c2 = arith.constant 2 : index
    %c0_25 = arith.constant 0 : index
    %c0_26 = arith.constant 0 : index
    %36 = vector.load %arg1[%c2, %c0_25, %c0_26] : memref<4x16x8xbf16, #tpu.memory_space<vmem>>, vector<1x16x8xbf16>
    %37 = vector.shape_cast %36 : vector<1x16x8xbf16> to vector<16x8xbf16>
    %cst_27 = arith.constant dense<0.000000e+00> : vector<32x8xf32>
    %38 = tpu.matmul %0, %37, %cst_27 {dimension_numbers = #tpu.dot_dimension_numbers<[1], [0], [0], [1], [0, 0, 1, 1], [], []>} : vector<32x16xbf16>, vector<16x8xbf16>, vector<32x8xf32> -> vector<32x8xf32>
    %39 = vector.broadcast %1 : vector<32x1xf32> to vector<32x8xf32>
    %40 = arith.addf %38, %39 : vector<32x8xf32>
    %cst_28 = arith.constant 0.000000e+00 : f32
    %41 = vector.broadcast %cst_28 : f32 to vector<32x8xf32>
    %42 = arith.maximumf %40, %41 : vector<32x8xf32>
    %43 = arith.truncf %42 : vector<32x8xf32> to vector<32x8xbf16>
    %cst_29 = arith.constant dense<0.000000e+00> : vector<96x8xf32>
    %44 = tpu.matmul %2, %43, %cst_29 {dimension_numbers = #tpu.dot_dimension_numbers<[1], [0], [0], [1], [0, 0, 1, 1], [], []>} : vector<96x32xbf16>, vector<32x8xbf16>, vector<96x8xf32> -> vector<96x8xf32>
    %45 = vector.extract_strided_slice %44 {offsets = [0, 0], sizes = [32, 8], strides = [1, 1]} : vector<96x8xf32> to vector<32x8xf32>
    %46 = vector.extract_strided_slice %44 {offsets = [32, 0], sizes = [32, 8], strides = [1, 1]} : vector<96x8xf32> to vector<32x8xf32>
    %47 = vector.broadcast %3 : vector<32x1xf32> to vector<32x8xf32>
    %48 = arith.addf %46, %47 : vector<32x8xf32>
    %cst_30 = arith.constant 0.000000e+00 : f32
    %49 = vector.broadcast %cst_30 : f32 to vector<32x8xf32>
    %50 = arith.maximumf %48, %49 : vector<32x8xf32>
    %51 = vector.broadcast %5 : vector<32x1xf32> to vector<32x8xf32>
    %52 = arith.mulf %42, %51 : vector<32x8xf32>
    %cst_31 = arith.constant dense<0.000000e+00> : vector<8xf32>
    %53 = vector.multi_reduction <add>, %52, %cst_31 [0] : vector<32x8xf32> to vector<8xf32>
    %54 = vector.shape_cast %53 : vector<8xf32> to vector<1x8xf32>
    %c3 = arith.constant 3 : index
    %c0_32 = arith.constant 0 : index
    %c0_33 = arith.constant 0 : index
    %55 = vector.load %arg1[%c3, %c0_32, %c0_33] : memref<4x16x8xbf16, #tpu.memory_space<vmem>>, vector<1x16x8xbf16>
    %56 = vector.shape_cast %55 : vector<1x16x8xbf16> to vector<16x8xbf16>
    %cst_34 = arith.constant dense<0.000000e+00> : vector<32x8xf32>
    %57 = tpu.matmul %0, %56, %cst_34 {dimension_numbers = #tpu.dot_dimension_numbers<[1], [0], [0], [1], [0, 0, 1, 1], [], []>} : vector<32x16xbf16>, vector<16x8xbf16>, vector<32x8xf32> -> vector<32x8xf32>
    %58 = vector.broadcast %1 : vector<32x1xf32> to vector<32x8xf32>
    %59 = arith.addf %57, %58 : vector<32x8xf32>
    %cst_35 = arith.constant 0.000000e+00 : f32
    %60 = vector.broadcast %cst_35 : f32 to vector<32x8xf32>
    %61 = arith.maximumf %59, %60 : vector<32x8xf32>
    %62 = arith.truncf %61 : vector<32x8xf32> to vector<32x8xbf16>
    %cst_36 = arith.constant dense<0.000000e+00> : vector<96x8xf32>
    %63 = tpu.matmul %2, %62, %cst_36 {dimension_numbers = #tpu.dot_dimension_numbers<[1], [0], [0], [1], [0, 0, 1, 1], [], []>} : vector<96x32xbf16>, vector<32x8xbf16>, vector<96x8xf32> -> vector<96x8xf32>
    %64 = vector.extract_strided_slice %63 {offsets = [0, 0], sizes = [32, 8], strides = [1, 1]} : vector<96x8xf32> to vector<32x8xf32>
    %65 = vector.extract_strided_slice %63 {offsets = [32, 0], sizes = [32, 8], strides = [1, 1]} : vector<96x8xf32> to vector<32x8xf32>
    %66 = vector.broadcast %3 : vector<32x1xf32> to vector<32x8xf32>
    %67 = arith.addf %65, %66 : vector<32x8xf32>
    %cst_37 = arith.constant 0.000000e+00 : f32
    %68 = vector.broadcast %cst_37 : f32 to vector<32x8xf32>
    %69 = arith.maximumf %67, %68 : vector<32x8xf32>
    %70 = vector.broadcast %5 : vector<32x1xf32> to vector<32x8xf32>
    %71 = arith.mulf %61, %70 : vector<32x8xf32>
    %cst_38 = arith.constant dense<0.000000e+00> : vector<8xf32>
    %72 = vector.multi_reduction <add>, %71, %cst_38 [0] : vector<32x8xf32> to vector<8xf32>
    %73 = vector.shape_cast %72 : vector<8xf32> to vector<1x8xf32>
    %74 = vector.broadcast %4 : vector<32x1xf32> to vector<32x8xf32>
    %75 = arith.mulf %32, %74 : vector<32x8xf32>
    %cst_39 = arith.constant dense<0.000000e+00> : vector<8xf32>
    %76 = vector.multi_reduction <add>, %75, %cst_39 [0] : vector<32x8xf32> to vector<8xf32>
    %77 = vector.shape_cast %76 : vector<8xf32> to vector<1x8xf32>
    %78 = arith.mulf %35, %16 : vector<32x8xf32>
    %cst_40 = arith.constant dense<0.000000e+00> : vector<8xf32>
    %79 = vector.multi_reduction <add>, %78, %cst_40 [0] : vector<32x8xf32> to vector<8xf32>
    %80 = vector.shape_cast %79 : vector<8xf32> to vector<1x8xf32>
    %81 = arith.mulf %35, %45 : vector<32x8xf32>
    %cst_41 = arith.constant dense<0.000000e+00> : vector<8xf32>
    %82 = vector.multi_reduction <add>, %81, %cst_41 [0] : vector<32x8xf32> to vector<8xf32>
    %83 = vector.shape_cast %82 : vector<8xf32> to vector<1x8xf32>
    %84 = arith.mulf %35, %64 : vector<32x8xf32>
    %cst_42 = arith.constant dense<0.000000e+00> : vector<8xf32>
    %85 = vector.multi_reduction <add>, %84, %cst_42 [0] : vector<32x8xf32> to vector<8xf32>
    %86 = vector.shape_cast %85 : vector<8xf32> to vector<1x8xf32>
    %87 = arith.maximumf %80, %83 : vector<1x8xf32>
    %88 = arith.maximumf %87, %86 : vector<1x8xf32>
    %89 = arith.subf %80, %88 : vector<1x8xf32>
    %90 = math.exp %89 : vector<1x8xf32>
    %91 = arith.subf %83, %88 : vector<1x8xf32>
    %92 = math.exp %91 : vector<1x8xf32>
    %93 = arith.subf %86, %88 : vector<1x8xf32>
    %94 = math.exp %93 : vector<1x8xf32>
    %95 = arith.addf %90, %92 : vector<1x8xf32>
    %96 = arith.addf %95, %94 : vector<1x8xf32>
    %97 = tpu.reciprocal %96 {approx = true} : vector<1x8xf32> -> vector<1x8xf32>
    %98 = arith.addf %25, %77 : vector<1x8xf32>
    %99 = vector.extract_strided_slice %6 {offsets = [0, 0], sizes = [1, 8], strides = [1, 1]} : vector<4x8xf32> to vector<1x8xf32>
    %100 = arith.addf %98, %99 : vector<1x8xf32>
    %101 = math.absf %100 : vector<1x8xf32>
    %cst_43 = arith.constant 0.000000e+00 : f32
    %102 = vector.broadcast %cst_43 : f32 to vector<1x8xf32>
    %103 = arith.subf %102, %101 : vector<1x8xf32>
    %104 = math.exp %103 : vector<1x8xf32>
    %cst_44 = arith.constant 0.000000e+00 : f32
    %105 = vector.broadcast %cst_44 : f32 to vector<1x8xf32>
    %106 = arith.cmpf oge, %100, %105 : vector<1x8xf32>
    %cst_45 = arith.constant 1.000000e+00 : f32
    %107 = vector.broadcast %cst_45 : f32 to vector<1x8xf32>
    %108 = arith.select %106, %107, %104 : vector<1x8xi1>, vector<1x8xf32>
    %cst_46 = arith.constant 1.000000e+00 : f32
    %109 = vector.broadcast %cst_46 : f32 to vector<1x8xf32>
    %110 = arith.addf %109, %104 : vector<1x8xf32>
    %111 = arith.divf %108, %110 : vector<1x8xf32>
    %112 = arith.mulf %90, %97 : vector<1x8xf32>
    %113 = arith.mulf %112, %111 : vector<1x8xf32>
    %114 = vector.broadcast %113 : vector<1x8xf32> to vector<32x8xf32>
    %115 = arith.mulf %21, %114 : vector<32x8xf32>
    %116 = arith.addf %54, %77 : vector<1x8xf32>
    %117 = vector.extract_strided_slice %6 {offsets = [2, 0], sizes = [1, 8], strides = [1, 1]} : vector<4x8xf32> to vector<1x8xf32>
    %118 = arith.addf %116, %117 : vector<1x8xf32>
    %119 = math.absf %118 : vector<1x8xf32>
    %cst_47 = arith.constant 0.000000e+00 : f32
    %120 = vector.broadcast %cst_47 : f32 to vector<1x8xf32>
    %121 = arith.subf %120, %119 : vector<1x8xf32>
    %122 = math.exp %121 : vector<1x8xf32>
    %cst_48 = arith.constant 0.000000e+00 : f32
    %123 = vector.broadcast %cst_48 : f32 to vector<1x8xf32>
    %124 = arith.cmpf oge, %118, %123 : vector<1x8xf32>
    %cst_49 = arith.constant 1.000000e+00 : f32
    %125 = vector.broadcast %cst_49 : f32 to vector<1x8xf32>
    %126 = arith.select %124, %125, %122 : vector<1x8xi1>, vector<1x8xf32>
    %cst_50 = arith.constant 1.000000e+00 : f32
    %127 = vector.broadcast %cst_50 : f32 to vector<1x8xf32>
    %128 = arith.addf %127, %122 : vector<1x8xf32>
    %129 = arith.divf %126, %128 : vector<1x8xf32>
    %130 = arith.mulf %92, %97 : vector<1x8xf32>
    %131 = arith.mulf %130, %129 : vector<1x8xf32>
    %132 = vector.broadcast %131 : vector<1x8xf32> to vector<32x8xf32>
    %133 = arith.mulf %50, %132 : vector<32x8xf32>
    %134 = arith.addf %115, %133 : vector<32x8xf32>
    %135 = arith.addf %73, %77 : vector<1x8xf32>
    %136 = vector.extract_strided_slice %6 {offsets = [3, 0], sizes = [1, 8], strides = [1, 1]} : vector<4x8xf32> to vector<1x8xf32>
    %137 = arith.addf %135, %136 : vector<1x8xf32>
    %138 = math.absf %137 : vector<1x8xf32>
    %cst_51 = arith.constant 0.000000e+00 : f32
    %139 = vector.broadcast %cst_51 : f32 to vector<1x8xf32>
    %140 = arith.subf %139, %138 : vector<1x8xf32>
    %141 = math.exp %140 : vector<1x8xf32>
    %cst_52 = arith.constant 0.000000e+00 : f32
    %142 = vector.broadcast %cst_52 : f32 to vector<1x8xf32>
    %143 = arith.cmpf oge, %137, %142 : vector<1x8xf32>
    %cst_53 = arith.constant 1.000000e+00 : f32
    %144 = vector.broadcast %cst_53 : f32 to vector<1x8xf32>
    %145 = arith.select %143, %144, %141 : vector<1x8xi1>, vector<1x8xf32>
    %cst_54 = arith.constant 1.000000e+00 : f32
    %146 = vector.broadcast %cst_54 : f32 to vector<1x8xf32>
    %147 = arith.addf %146, %141 : vector<1x8xf32>
    %148 = arith.divf %145, %147 : vector<1x8xf32>
    %149 = arith.mulf %94, %97 : vector<1x8xf32>
    %150 = arith.mulf %149, %148 : vector<1x8xf32>
    %151 = vector.broadcast %150 : vector<1x8xf32> to vector<32x8xf32>
    %152 = arith.mulf %69, %151 : vector<32x8xf32>
    %153 = arith.addf %134, %152 : vector<32x8xf32>
    %c0_55 = arith.constant 0 : index
    %c0_56 = arith.constant 0 : index
    %154 = vector.load %arg9[%c0_55, %c0_56] : memref<32x32xbf16, #tpu.memory_space<vmem>>, vector<32x32xbf16>
    %155 = arith.truncf %32 : vector<32x8xf32> to vector<32x8xbf16>
    %cst_57 = arith.constant dense<0.000000e+00> : vector<32x8xf32>
    %156 = tpu.matmul %154, %155, %cst_57 {dimension_numbers = #tpu.dot_dimension_numbers<[1], [0], [0], [1], [0, 0, 1, 1], [], []>} : vector<32x32xbf16>, vector<32x8xbf16>, vector<32x8xf32> -> vector<32x8xf32>
    %c0_58 = arith.constant 0 : index
    %c0_59 = arith.constant 0 : index
    %157 = vector.load %arg10[%c0_58, %c0_59] : memref<32x32xbf16, #tpu.memory_space<vmem>>, vector<32x32xbf16>
    %158 = arith.truncf %153 : vector<32x8xf32> to vector<32x8xbf16>
    %cst_60 = arith.constant dense<0.000000e+00> : vector<32x8xf32>
    %159 = tpu.matmul %157, %158, %cst_60 {dimension_numbers = #tpu.dot_dimension_numbers<[1], [0], [0], [1], [0, 0, 1, 1], [], []>} : vector<32x32xbf16>, vector<32x8xbf16>, vector<32x8xf32> -> vector<32x8xf32>
    %160 = arith.addf %156, %159 : vector<32x8xf32>
    %c0_61 = arith.constant 0 : index
    %c0_62 = arith.constant 0 : index
    %161 = vector.load %arg11[%c0_61, %c0_62] : memref<32x1xf32, #tpu.memory_space<vmem>>, vector<32x1xf32>
    %162 = vector.broadcast %161 : vector<32x1xf32> to vector<32x8xf32>
    %163 = arith.addf %160, %162 : vector<32x8xf32>
    %cst_63 = arith.constant 0.000000e+00 : f32
    %164 = vector.broadcast %cst_63 : f32 to vector<32x8xf32>
    %165 = arith.maximumf %163, %164 : vector<32x8xf32>
    %c0_64 = arith.constant 0 : index
    %c0_65 = arith.constant 0 : index
    %166 = vector.load %arg12[%c0_64, %c0_65] : memref<32x1xf32, #tpu.memory_space<vmem>>, vector<32x1xf32>
    %167 = vector.broadcast %166 : vector<32x1xf32> to vector<32x8xf32>
    %168 = arith.mulf %165, %167 : vector<32x8xf32>
    %cst_66 = arith.constant dense<0.000000e+00> : vector<8xf32>
    %169 = vector.multi_reduction <add>, %168, %cst_66 [0] : vector<32x8xf32> to vector<8xf32>
    %170 = vector.shape_cast %169 : vector<8xf32> to vector<1x8xf32>
    %c0_67 = arith.constant 0 : index
    %c0_68 = arith.constant 0 : index
    %171 = vector.load %arg13[%c0_67, %c0_68] : memref<1x1xf32, #tpu.memory_space<vmem>>, vector<1x1xf32>
    %172 = vector.broadcast %171 : vector<1x1xf32> to vector<1x8xf32>
    %173 = arith.addf %170, %172 : vector<1x8xf32>
    %c0_69 = arith.constant 0 : index
    %c0_70 = arith.constant 0 : index
    %174 = vector.load %arg14[%c0_69, %c0_70] : memref<1x8xf32, #tpu.memory_space<vmem>>, vector<1x8xf32>
    tpu.vector_store %arg14[%c0_69, %c0_70], %173 {strides = array<i32>} : memref<1x8xf32, #tpu.memory_space<vmem>>, vector<1x8xf32>,
    return
  }
  func.func @transform_0(%arg0: i32) -> (i32, i32, i32) {
    %c0_i32 = arith.constant 0 : i32
    %c0_i32_0 = arith.constant 0 : i32
    %c0_i32_1 = arith.constant 0 : i32
    return %c0_i32, %c0_i32_0, %arg0 : i32, i32, i32
  }
  func.func @transform_1(%arg0: i32) -> (i32, i32) {
    %c0_i32 = arith.constant 0 : i32
    %c0_i32_0 = arith.constant 0 : i32
    return %c0_i32, %arg0 : i32, i32
  }
  func.func @transform_2(%arg0: i32) -> (i32, i32) {
    %c0_i32 = arith.constant 0 : i32
    %c0_i32_0 = arith.constant 0 : i32
    %c0_i32_1 = arith.constant 0 : i32
    return %c0_i32, %c0_i32_0 : i32, i32
  }
  func.func @transform_3(%arg0: i32) -> (i32, i32) {
    %c0_i32 = arith.constant 0 : i32
    %c0_i32_0 = arith.constant 0 : i32
    %c0_i32_1 = arith.constant 0 : i32
    return %c0_i32, %c0_i32_0 : i32, i32
  }
  func.func @transform_4(%arg0: i32) -> (i32, i32) {
    %c0_i32 = arith.constant 0 : i32
    %c0_i32_0 = arith.constant 0 : i32
    %c0_i32_1 = arith.constant 0 : i32
    return %c0_i32, %c0_i32_0 : i32, i32
  }
  func.func @transform_5(%arg0: i32) -> (i32, i32) {
    %c0_i32 = arith.constant 0 : i32
    %c0_i32_0 = arith.constant 0 : i32
    %c0_i32_1 = arith.constant 0 : i32
    return %c0_i32, %c0_i32_0 : i32, i32
  }
  func.func @transform_6(%arg0: i32) -> (i32, i32) {
    %c0_i32 = arith.constant 0 : i32
    %c0_i32_0 = arith.constant 0 : i32
    %c0_i32_1 = arith.constant 0 : i32
    return %c0_i32, %c0_i32_0 : i32, i32
  }
  func.func @transform_7(%arg0: i32) -> (i32, i32) {
    %c0_i32 = arith.constant 0 : i32
    %c0_i32_0 = arith.constant 0 : i32
    %c0_i32_1 = arith.constant 0 : i32
    return %c0_i32, %c0_i32_0 : i32, i32
  }
  func.func @transform_8(%arg0: i32) -> (i32, i32) {
    %c0_i32 = arith.constant 0 : i32
    %c0_i32_0 = arith.constant 0 : i32
    %c0_i32_1 = arith.constant 0 : i32
    return %c0_i32, %c0_i32_0 : i32, i32
  }
  func.func @transform_9(%arg0: i32) -> (i32, i32) {
    %c0_i32 = arith.constant 0 : i32
    %c0_i32_0 = arith.constant 0 : i32
    %c0_i32_1 = arith.constant 0 : i32
    return %c0_i32, %c0_i32_0 : i32, i32
  }
  func.func @transform_10(%arg0: i32) -> (i32, i32) {
    %c0_i32 = arith.constant 0 : i32
    %c0_i32_0 = arith.constant 0 : i32
    %c0_i32_1 = arith.constant 0 : i32
    return %c0_i32, %c0_i32_0 : i32, i32
  }
  func.func @transform_11(%arg0: i32) -> (i32, i32) {
    %c0_i32 = arith.constant 0 : i32
    %c0_i32_0 = arith.constant 0 : i32
    %c0_i32_1 = arith.constant 0 : i32
    return %c0_i32, %c0_i32_0 : i32, i32
  }
  func.func @transform_12(%arg0: i32) -> (i32, i32) {
    %c0_i32 = arith.constant 0 : i32
    %c0_i32_0 = arith.constant 0 : i32
    %c0_i32_1 = arith.constant 0 : i32
    return %c0_i32, %c0_i32_0 : i32, i32
  }
  func.func @transform_13(%arg0: i32) -> (i32, i32) {
    %c0_i32 = arith.constant 0 : i32
    %c0_i32_0 = arith.constant 0 : i32
    return %c0_i32, %arg0 : i32, i32
  }
}

</mosaic_0001>

<bundles_post_ra>
// kernel: tpu_custom_call.1
= control target key start
LH: loop header
LB: loop body
LE: loop exit
PB: predicated region body
PF: predicated region fallthrough
CT: control target
= control target key end

     0   :  { %s2008_s0 = inlined_call_operand.vmem [shape: bf16[4,16,8], index: 0, kind: input, shape index: {}]   ;;  %s2009_s1 = inlined_call_operand.vmem [shape: f32[4,8], index: 1, kind: input, shape index: {}]   ;;  %s2010_s2 = inlined_call_operand.vmem [shape: bf16[32,16], index: 2, kind: input, shape index: {}]   ;;  %s2011_s3 = inlined_call_operand.vmem [shape: f32[32,1], index: 3, kind: input, shape index: {}]   ;;  %s2012_s4 = inlined_call_operand.vmem [shape: bf16[96,32], index: 4, kind: input, shape index: {}]   ;;  %s2013_s5 = inlined_call_operand.vmem [shape: f32[32,1], index: 5, kind: input, shape index: {}]   ;;  %s2014_s6 = inlined_call_operand.vmem [shape: f32[32,1], index: 6, kind: input, shape index: {}]   ;;  %s2015_s7 = inlined_call_operand.vmem [shape: f32[32,1], index: 7, kind: input, shape index: {}]   ;;  %s2016_s8 = inlined_call_operand.vmem [shape: bf16[32,32], index: 8, kind: input, shape index: {}]   ;;  %s2017_s9 = inlined_call_operand.vmem [shape: bf16[32,32], index: 9, kind: input, shape index: {}]   ;;  %s2018_s10 = inlined_call_operand.vmem [shape: f32[32,1], index: 10, kind: input, shape index: {}]   ;;  %s2019_s11 = inlined_call_operand.vmem [shape: f32[32,1], index: 11, kind: input, shape index: {}]   ;;  %s2020_s12 = inlined_call_operand.<no memory space> [shape: f32[1,1], index: 12, kind: input, shape index: {}]   ;;  %s2021_s13 = inlined_call_operand.hbm [shape: f32[1,8], index: 13, kind: output, shape index: {}]  }
   0x1   :  { %v18_v0 = vstv %s2020_s12 }
   0x2   :  { %19 = vst [vmem:[#allocation2] sm:$0x1] %v18_v0 }
   0x3   :  { %v1477_v1 = vld [vmem:[%s2008_s0] sm:$0xff]   ;;  %vm119_vm0 = vcmask 130048   ;;  %v1623_v3 = vld [vmem:[%s2010_s2 + $0x8] sm:$0xff]   ;;  %v1537_v4 = vmov 0   ;;  %v54_v7 = vld [vmem:[%s2011_s3 + $0x10] sm:$0xff] }
   0x4   :  { %v1618_v2 = vld [vmem:[%s2010_s2] sm:$0xff]   ;;  %1365 = vmatprep.subr.bf16.mxu0 %v1477_v1  ;;  %1475 = vset.pattern.permute.xlu0 %v1537_v4  ;;  %v1480_v5 = vld [vmem:[%s2008_s0 + $0x8] sm:$0xff]   ;;  %v55_v9 = vld [vmem:[%s2011_s3 + $0x18] sm:$0xff] }
   0x5   :  { %1366 = vmatpush3.bf16.msra.mxu0 %v1477_v1  ;;  %1367 = vmatprep.mubr.msk.bf16.mxu0 %vm119_vm0, %v1618_v2  ;;  %v52_v6 = vld [vmem:[%s2011_s3] sm:$0xff]  ;;  %v53_v8 = vld [vmem:[%s2011_s3 + $0x8] sm:$0xff]  ;;  %v78_v14 = vld [vmem:[%s2015_s7 + $0x10] sm:$0xff] }
   0x6   :  { %1476 = vset.pattern.permute.xlu1 %v1537_v4  ;;  %1387 = vmatprep.subr.bf16.mxu0 %v1480_v5  ;;  %v76_v10 = vld [vmem:[%s2015_s7] sm:$0xff]  ;;  %v77_v11 = vld [vmem:[%s2015_s7 + $0x8] sm:$0xff]  ;;  %v74_v15 = vld [vmem:[%s2014_s6 + $0x10] sm:$0xff] }
   0x7   :  { %85 = vperm.xlu0 %1475, %v52_v6   ;;  %95 = vperm.xlu1 %1476, %v54_v7   ;;  %v72_v12 = vld [vmem:[%s2014_s6] sm:$0xff]  ;;  %v73_v13 = vld [vmem:[%s2014_s6 + $0x8] sm:$0xff] }
   0x8   :  { %1368 = vmatmul.mubr.msk.bf16.vlgmr.msra.gmra.mrb[0].mxu0 %vm119_vm0, %v1623_v3 }
   0x9   :  { %1388 = vmatpush3.bf16.msra.mxu0 %v1480_v5  ;;  %1389 = vmatprep.mubr.msk.bf16.mxu0 %vm119_vm0, %v1618_v2 }
   0xb   :  { %90 = vperm.xlu0 %1475, %v53_v8   ;;  %100 = vperm.xlu1 %1476, %v55_v9  }
   0xf   :  { %337 = vperm.xlu0 %1475, %v76_v10   ;;  %342 = vperm.xlu1 %1476, %v77_v11  }
  0x10   :  { %1390 = vmatmul.mubr.msk.bf16.vlgmr.msra.gmra.mrb[4].mxu0 %vm119_vm0, %v1623_v3 }
  0x13   :  { %844 = vperm.xlu0 %1475, %v72_v12   ;;  %849 = vperm.xlu1 %1476, %v73_v13  }
  0x14   :  { %20 = vsyncpa [#allocation4], 0  ;;  %v79_v16 = vld [vmem:[%s2015_s7 + $0x18] sm:$0xff]  ;;  %v68_v18 = vld [vmem:[%s2013_s5] sm:$0xff]  ;;  %vm211_vm1 = vcmask 261120   ;;  %vm359_vm2 = vcmask 64512  }
  0x15   :  { %v75_v17 = vld [vmem:[%s2014_s6 + $0x18] sm:$0xff]  ;;  %v69_v19 = vld [vmem:[%s2013_s5 + $0x8] sm:$0xff]  ;;  %v70_v20 = vld [vmem:[%s2013_s5 + $0x10] sm:$0xff]  ;;  %vm1239_vm6 = vcmask 57344  }
  0x16   :  { %v71_v21 = vld [vmem:[%s2013_s5 + $0x18] sm:$0xff]  ;;  %v1155_v22 = vld [vmem:[%s2018_s10] sm:$0xff]  ;;  %v1156_v23 = vld [vmem:[%s2018_s10 + $0x8] sm:$0xff] }
  0x17   :  { %347 = vperm.xlu0 %1475, %v78_v14   ;;  %854 = vperm.xlu1 %1476, %v74_v15   ;;  %v1157_v24 = vld [vmem:[%s2018_s10 + $0x10] sm:$0xff]  ;;  %v1158_v25 = vld [vmem:[%s2018_s10 + $0x18] sm:$0xff]  ;;  %v1187_v26 = vld [vmem:[%s2019_s11] sm:$0xff] }
  0x18   :  { %v1188_v27 = vld [vmem:[%s2019_s11 + $0x8] sm:$0xff]  ;;  %v1189_v28 = vld [vmem:[%s2019_s11 + $0x10] sm:$0xff]  ;;  %v1190_v29 = vld [vmem:[%s2019_s11 + $0x18] sm:$0xff] }
  0x19   :  { %v1228_v30 = vld [vmem:[#allocation2] sm:$0x1]  ;;  %v1487_v13 = vld [vmem:[%s2008_s0 + $0x10] sm:$0xff]  }
  0x1a   :  { %v1711_v31 = vld [vmem:[%s2012_s4] sm:$0xff]  }
  0x1b   :  { %352 = vperm.xlu0 %1475, %v79_v16   ;;  %859 = vperm.xlu1 %1476, %v75_v17  }
  0x1c   :  { %1375 = vmatprep.mubr.msk.bf16.mxu1 %vm211_vm1, %v1711_v31  ;;  %1397 = vmatprep.mubr.msk.bf16.mxu0 %vm211_vm1, %v1711_v31 }
  0x1f   :  { %309 = vperm.xlu0 %1475, %v68_v18   ;;  %314 = vperm.xlu1 %1476, %v69_v19   ;;  %v1755_v19 = vld [vmem:[%s2012_s4 + $0x8] sm:$0xff]  }
  0x23   :  { %319 = vperm.xlu0 %1475, %v70_v20   ;;  %324 = vperm.xlu1 %1476, %v71_v21  }
  0x27   :  { %1161 = vperm.xlu0 %1475, %v1155_v22   ;;  %1166 = vperm.xlu1 %1476, %v1156_v23   ;;  %v1762_v22 = vld [vmem:[%s2012_s4 + $0x10] sm:$0xff]  }
  0x2b   :  { %1171 = vperm.xlu0 %1475, %v1157_v24   ;;  %1176 = vperm.xlu1 %1476, %v1158_v25  }
  0x2f   :  { %1193 = vperm.xlu0 %1475, %v1187_v26   ;;  %1198 = vperm.xlu1 %1476, %v1188_v27  }
  0x33   :  { %1203 = vperm.xlu0 %1475, %v1189_v28   ;;  %1208 = vperm.xlu1 %1476, %v1190_v29  }
  0x37   :  { %1231 = vperm.xlu0 %1475, %v1228_v30  }
  0x86   :  { %v1717_v32 = vpop.permute.xlu0 %85  ;;  %v1721_v34 = vpop.permute.xlu1 %95 }
  0x8a   :  { %v1719_v33 = vpop.permute.xlu0 %90  ;;  %v1725_v36 = vpop.permute.xlu1 %100 }
  0x8e   :  { %v1723_v35 = vpop.permute.xlu0 %337  ;;  %v1727_v38 = vpop.permute.xlu1 %342 }
  0x92   :  { %v845_v37 = vpop.permute.xlu0 %844  ;;  %v850_v50 = vpop.permute.xlu1 %849 }
  0x96   :  { %v1731_v44 = vpop.permute.xlu0 %347  ;;  %v855_v5 = vpop.permute.xlu1 %854 }
  0x9a   :  { %v1738_v59 = vpop.permute.xlu0 %352  ;;  %v860_v26 = vpop.permute.xlu1 %859 }
  0xdb   :  { %v1369_v39 = vpop.f32.mrb[0].mxu0 }
  0xdc   :  { %v169_v40 = vadd.f32 %v1369_v39, %v1721_v34  ;;  %v160_v41 = vpop.f32.mrb[1].mxu0 }
  0xdd   :  { %v161_v42 = vadd.f32 %v160_v41, %v1717_v32  ;;  %v1370_v43 = vpop.f32.mrb[2].mxu0  ;;  %v1488_v41 = vld [vmem:[%s2008_s0 + $0x18] sm:$0xff]  }
  0xde   :  { %v172_v45 = vadd.f32 %v1370_v43, %v1725_v36  ;;  %v163_v46 = vpop.f32.mrb[3].mxu0  ;;  %v177_v47 = vmax.f32 %v169_v40, 0.0 }
  0xdf   :  { %v175_v48 = vmax.f32 %v161_v42, 0.0  ;;  %v164_v49 = vadd.f32 %v163_v46, %v1719_v33 }
  0xe0   :  { %v178_v51 = vmax.f32 %v172_v45, 0.0  ;;  %v357_v55 = vmul.f32 %v1731_v44, %v177_v47  ;;  %v1783_v45 = vld [vmem:[%s2012_s4 + $0x18] sm:$0xff]  }
  0xe1   :  { %v355_v52 = vmul.f32 %v1723_v35, %v175_v48  ;;  %v176_v53 = vmax.f32 %v164_v49, 0.0 }
  0xe2   :  { %v180_v54 = vpack.c.bf16 %v178_v51, %v177_v47  ;;  %v358_v63 = vmul.f32 %v1738_v59, %v178_v51  ;;  %v363_v9 = vsel %vm359_vm2, %v357_v55, 0.0 }
  0xe3   :  { %v356_v56 = vmul.f32 %v1727_v38, %v176_v53  ;;  %v1391_v57 = vpop.f32.mrb[4].mxu0  ;;  %v179_v58 = vpack.c.bf16 %v176_v53, %v175_v48  ;;  %v360_v62 = vsel %vm359_vm2, %v355_v52, 0.0  ;;  %v1789_v48 = vld [vmem:[%s2012_s4 + $0x20] sm:$0xff]   ;;  %v1802_v53 = vld [vmem:[%s2012_s4 + $0x28] sm:$0xff]  }
  0xe4   :  { %v425_v60 = vadd.f32 %v1391_v57, %v1721_v34  ;;  %v416_v61 = vpop.f32.mrb[5].mxu0  ;;  %v365_v16 = vsel %vm359_vm2, %v358_v63, 0.0 }
  0xe5   :  { %v361_v0 = vsel %vm359_vm2, %v356_v56, 0.0  ;;  %v417_v1 = vadd.f32 %v416_v61, %v1717_v32  ;;  %1371 = vmatprep.subr.bf16.mxu1 %v179_v58  ;;  %v1392_v4 = vpop.f32.mrb[6].mxu0 }
  0xe6   :  { %v362_v6 = vadd.f32 %v361_v0, %v360_v62  ;;  %v428_v7 = vadd.f32 %v1392_v4, %v1725_v36  ;;  %1372 = vmatpush3.bf16.msra.mxu1 %v179_v58  ;;  %v419_v8 = vpop.f32.mrb[7].mxu0  ;;  %v433_v10 = vmax.f32 %v425_v60, 0.0 }
  0xe7   :  { %v431_v11 = vmax.f32 %v417_v1, 0.0  ;;  %v420_v12 = vadd.f32 %v419_v8, %v1719_v33  ;;  %1373 = vmatprep.subr.bf16.mxu1 %v180_v54 }
  0xe8   :  { %v364_v14 = vadd.f32 %v363_v9, %v362_v6  ;;  %v434_v15 = vmax.f32 %v428_v7, 0.0  ;;  %v864_v23 = vmul.f32 %v855_v5, %v433_v10 }
  0xe9   :  { %v862_v17 = vmul.f32 %v845_v37, %v431_v11  ;;  %v432_v18 = vmax.f32 %v420_v12, 0.0 }
  0xea   :  { %v366_v20 = vadd.f32 %v365_v16, %v364_v14  ;;  %v1757_v21 = vpack.c.bf16 %v434_v15, %v433_v10  ;;  %1374 = vmatpush3.bf16.msra.mxu1 %v180_v54  ;;  %v865_v29 = vmul.f32 %v860_v26, %v434_v15  ;;  %v869_v40 = vsel %vm359_vm2, %v864_v23, 0.0 }
  0xeb   :  { %v1764_v24 = vpack.c.bf16 %v432_v18, %v431_v11  ;;  %v863_v25 = vmul.f32 %v850_v50, %v432_v18  ;;  %1409 = vmatprep.subr.bf16.mxu1 %v1487_v13  ;;  %v866_v28 = vsel %vm359_vm2, %v862_v17, 0.0 }
  0xec   :  { %v367_v27 = vrot.slane %v366_v20, 4  ;;  %v871_v43 = vsel %vm359_vm2, %v865_v29, 0.0 }
  0xed   :  { %v867_v30 = vsel %vm359_vm2, %v863_v25, 0.0  ;;  %1376 = vmatmul.mubr.msk.bf16.vlgmr.msra.gmra.mrb[0].mxu1 %vm211_vm1, %v1755_v19  ;;  %1393 = vmatprep.subr.bf16.mxu0 %v1764_v24 }
  0xee   :  { %v368_v37 = vadd.f32 %v367_v27, %v366_v20  ;;  %v868_v39 = vadd.f32 %v867_v30, %v866_v28  ;;  %1394 = vmatpush3.bf16.msra.mxu0 %v1764_v24  ;;  %1379 = vmatprep.mubr.msk.bf16.mxu1 %vm211_vm1, %v1762_v22 }
  0xef   :  { %1395 = vmatprep.subr.bf16.mxu0 %v1757_v21  ;;  %1410 = vmatpush3.bf16.msra.mxu1 %v1487_v13 }
  0xf0   :  { %v870_v42 = vadd.f32 %v869_v40, %v868_v39  ;;  %v369_v46 = vrot.slane %v368_v37, 2 }
  0xf2   :  { %v872_v47 = vadd.f32 %v871_v43, %v870_v42  ;;  %1396 = vmatpush3.bf16.msra.mxu0 %v1757_v21  ;;  %v370_v50 = vadd.f32 %v369_v46, %v368_v37 }
  0xf3   :  { %1431 = vmatprep.subr.bf16.mxu0 %v1488_v41 }
  0xf4   :  { %v873_v49 = vrot.slane %v872_v47, 4  ;;  %v371_v54 = vrot.slane %v370_v50, 1 }
  0xf5   :  { %1380 = vmatmul.mubr.msk.bf16.gmra.mrb[4].mxu1 %vm211_vm1, %v1783_v45  ;;  %1398 = vmatmul.mubr.msk.bf16.vlgmr.msra.gmra.mrb[8].mxu0 %vm211_vm1, %v1755_v19 }
  0xf6   :  { %v874_v51 = vadd.f32 %v873_v49, %v872_v47  ;;  %1383 = vmatprep.mubr.msk.bf16.mxu1 %vm211_vm1, %v1789_v48  ;;  %1401 = vmatprep.mubr.msk.bf16.mxu0 %vm211_vm1, %v1762_v22  ;;  %v372_v57 = vadd.f32 %v371_v54, %v370_v50 }
  0xf7   :  { %1432 = vmatpush3.bf16.msra.mxu0 %v1488_v41 }
  0xf8   :  { %v875_v52 = vrot.slane %v874_v51, 2 }
  0xfa   :  { %v876_v55 = vadd.f32 %v875_v52, %v874_v51 }
  0xfc   :  { %v877_v56 = vrot.slane %v876_v55, 1 }
  0xfd   :  { %1384 = vmatmul.mubr.msk.bf16.gmra.mrb[8].mxu1 %vm211_vm1, %v1802_v53  ;;  %1402 = vmatmul.mubr.msk.bf16.gmra.mrb[12].mxu0 %vm211_vm1, %v1783_v45 }
  0xfe   :  { %v1808_v58 = vadd.f32 %v877_v56, %v876_v55  ;;  %1405 = vmatprep.mubr.msk.bf16.mxu0 %vm211_vm1, %v1789_v48  ;;  %1411 = vmatprep.mubr.msk.bf16.mxu1 %vm119_vm0, %v1618_v2 }
 0x100   :  { %v1815_v60 = vadd.f32 %v1808_v58, %v372_v57 }
 0x105   :  { %1406 = vmatmul.mubr.msk.bf16.gmra.mrb[16].mxu0 %vm211_vm1, %v1802_v53  ;;  %1412 = vmatmul.mubr.msk.bf16.vlgmr.msra.gmra.mrb[12].mxu1 %vm119_vm0, %v1623_v3 }
 0x106   :  { %1433 = vmatprep.mubr.msk.bf16.mxu0 %vm119_vm0, %v1618_v2  ;;  %1419 = vmatprep.mubr.msk.bf16.mxu1 %vm211_vm1, %v1711_v31 }
 0x10d   :  { %1434 = vmatmul.mubr.msk.bf16.vlgmr.msra.gmra.mrb[20].mxu0 %vm119_vm0, %v1623_v3 }
 0x10e   :  { %1441 = vmatprep.mubr.msk.bf16.mxu0 %vm211_vm1, %v1711_v31 }
 0x1c0   :  { %v1377_v61 = vpop.f32.mrb[0].mxu1 }
 0x1c1   :  { %v264_v62 = vpop.f32.mrb[1].mxu1 }
 0x1c2   :  { %v1378_v63 = vpop.f32.mrb[2].mxu1 }
 0x1c3   :  { %v267_v0 = vpop.f32.mrb[3].mxu1 }
 0x1c8   :  { %v1829_v1 = vpop.f32.mrb[4].mxu1  ;;  %v1399_v4 = vpop.f32.mrb[8].mxu0 }
 0x1c9   :  { %v1831_v5 = vpop.f32.mrb[5].mxu1  ;;  %v471_v6 = vpop.f32.mrb[9].mxu0 }
 0x1ca   :  { %v1833_v2 = vpop.f32.mrb[6].mxu1  ;;  %v1400_v7 = vpop.f32.mrb[10].mxu0 }
 0x1cb   :  { %v1835_v8 = vpop.f32.mrb[7].mxu1  ;;  %v473_v9 = vpop.f32.mrb[11].mxu0 }
 0x1d0   :  { %v1403_v3 = vpop.f32.mrb[12].mxu0  ;;  %v1385_v10 = vpop.f32.mrb[8].mxu1 }
 0x1d1   :  { %v483_v11 = vpop.f32.mrb[13].mxu0  ;;  %v296_v31 = vpop.f32.mrb[9].mxu1 }
 0x1d2   :  { %v1404_v12 = vpop.f32.mrb[14].mxu0  ;;  %v1386_v13 = vpop.f32.mrb[10].mxu1 }
 0x1d3   :  { %v485_v14 = vpop.f32.mrb[15].mxu0  ;;  %v298_v15 = vpop.f32.mrb[11].mxu1 }
 0x1d8   :  { %v1837_v16 = vpop.f32.mrb[16].mxu0  ;;  %v1413_v17 = vpop.f32.mrb[12].mxu1 }
 0x1d9   :  { %v881_v18 = vmul.f32 %v1837_v16, %v1377_v61  ;;  %v562_v20 = vadd.f32 %v1413_v17, %v1721_v34  ;;  %v1841_v23 = vpop.f32.mrb[17].mxu0  ;;  %v553_v25 = vpop.f32.mrb[13].mxu1 }
 0x1da   :  { %v879_v26 = vmul.f32 %v1841_v23, %v264_v62  ;;  %v554_v27 = vadd.f32 %v553_v25, %v1717_v32  ;;  %v1845_v28 = vpop.f32.mrb[18].mxu0  ;;  %v1414_v29 = vpop.f32.mrb[14].mxu1 }
 0x1db   :  { %v882_v30 = vmul.f32 %v1845_v28, %v1378_v63  ;;  %v565_v37 = vadd.f32 %v1414_v29, %v1725_v36  ;;  %v1849_v39 = vpop.f32.mrb[19].mxu0  ;;  %v556_v40 = vpop.f32.mrb[15].mxu1  ;;  %v570_v41 = vmax.f32 %v562_v20, 0.0  ;;  %v886_v56 = vsel %vm359_vm2, %v881_v18, 0.0 }
 0x1dc   :  { %v568_v42 = vmax.f32 %v554_v27, 0.0  ;;  %v880_v43 = vmul.f32 %v1849_v39, %v267_v0  ;;  %v557_v46 = vadd.f32 %v556_v40, %v1719_v33  ;;  %v883_v49 = vsel %vm359_vm2, %v879_v26, 0.0 }
 0x1dd   :  { %v571_v47 = vmax.f32 %v565_v37, 0.0  ;;  %v661_v57 = vmul.f32 %v570_v41, %v1731_v44  ;;  %v888_v0 = vsel %vm359_vm2, %v882_v30, 0.0 }
 0x1de   :  { %v659_v50 = vmul.f32 %v568_v42, %v1723_v35  ;;  %v884_v51 = vsel %vm359_vm2, %v880_v43, 0.0  ;;  %v569_v52 = vmax.f32 %v557_v46, 0.0 }
 0x1df   :  { %v573_v54 = vpack.c.bf16 %v571_v47, %v570_v41  ;;  %v885_v55 = vadd.f32 %v884_v51, %v883_v49  ;;  %v662_v3 = vmul.f32 %v571_v47, %v1738_v59 }
 0x1e0   :  { %v572_v61 = vpack.c.bf16 %v569_v52, %v568_v42  ;;  %v660_v62 = vmul.f32 %v569_v52, %v1727_v38  ;;  %v1435_v63 = vpop.f32.mrb[20].mxu0  ;;  %v663_v9 = vsel %vm359_vm2, %v659_v50, 0.0 }
 0x1e1   :  { %v887_v4 = vadd.f32 %v886_v56, %v885_v55  ;;  %v728_v6 = vadd.f32 %v1435_v63, %v1721_v34  ;;  %v719_v7 = vpop.f32.mrb[21].mxu0  ;;  %v666_v34 = vsel %vm359_vm2, %v661_v57, 0.0 }
 0x1e2   :  { %v664_v10 = vsel %vm359_vm2, %v660_v62, 0.0  ;;  %v720_v11 = vadd.f32 %v719_v7, %v1717_v32  ;;  %1415 = vmatprep.subr.bf16.mxu1 %v572_v61  ;;  %v1436_v31 = vpop.f32.mrb[22].mxu0  ;;  %v668_v32 = vsel %vm359_vm2, %v662_v3, 0.0 }
 0x1e3   :  { %v1865_v12 = vadd.f32 %v888_v0, %v887_v4  ;;  %v665_v13 = vadd.f32 %v664_v10, %v663_v9  ;;  %v731_v14 = vadd.f32 %v1436_v31, %v1725_v36  ;;  %1416 = vmatpush3.bf16.msra.mxu1 %v572_v61  ;;  %v722_v15 = vpop.f32.mrb[23].mxu0  ;;  %v736_v17 = vmax.f32 %v728_v6, 0.0  ;;  %v1489_v0 = vld [vmem:[%s2017_s9] sm:$0xff]  }
 0x1e4   :  { %v734_v18 = vmax.f32 %v720_v11, 0.0  ;;  %v723_v20 = vadd.f32 %v722_v15, %v1719_v33  ;;  %1417 = vmatprep.subr.bf16.mxu1 %v573_v54 }
 0x1e5   :  { %v667_v25 = vadd.f32 %v666_v34, %v665_v13  ;;  %v737_v26 = vmax.f32 %v731_v14, 0.0  ;;  %v827_v36 = vmul.f32 %v736_v17, %v1731_v44 }
 0x1e6   :  { %v825_v27 = vmul.f32 %v734_v18, %v1723_v35  ;;  %v735_v29 = vmax.f32 %v723_v20, 0.0 }
 0x1e7   :  { %v669_v30 = vadd.f32 %v668_v32, %v667_v25  ;;  %v739_v37 = vpack.c.bf16 %v737_v26, %v736_v17  ;;  %1418 = vmatpush3.bf16.msra.mxu1 %v573_v54  ;;  %v828_v33 = vmul.f32 %v737_v26, %v1738_v59  ;;  %v832_v44 = vsel %vm359_vm2, %v827_v36, 0.0 }
 0x1e8   :  { %v738_v40 = vpack.c.bf16 %v735_v29, %v734_v18  ;;  %v826_v41 = vmul.f32 %v735_v29, %v1727_v38  ;;  %v829_v43 = vsel %vm359_vm2, %v825_v27, 0.0 }
 0x1e9   :  { %v670_v42 = vrot.slane %v669_v30, 4  ;;  %v834_v50 = vsel %vm359_vm2, %v828_v33, 0.0 }
 0x1ea   :  { %v830_v46 = vsel %vm359_vm2, %v826_v41, 0.0  ;;  %1420 = vmatmul.mubr.msk.bf16.vlgmr.msra.gmra.mrb[16].mxu1 %vm211_vm1, %v1755_v19  ;;  %1437 = vmatprep.subr.bf16.mxu0 %v738_v40 }
 0x1eb   :  { %v671_v35 = vadd.f32 %v670_v42, %v669_v30  ;;  %v831_v47 = vadd.f32 %v830_v46, %v829_v43  ;;  %1438 = vmatpush3.bf16.msra.mxu0 %v738_v40  ;;  %1423 = vmatprep.mubr.msk.bf16.mxu1 %vm211_vm1, %v1762_v22  ;;  %v80_v42 = vld [vmem:[%s2009_s1] sm:$0xf] }
 0x1ec   :  { %1439 = vmatprep.subr.bf16.mxu0 %v739_v37 }
 0x1ed   :  { %v672_v38 = vrot.slane %v671_v35, 2  ;;  %v833_v49 = vadd.f32 %v832_v44, %v831_v47 }
 0x1ef   :  { %v673_v59 = vadd.f32 %v672_v38, %v671_v35  ;;  %v835_v51 = vadd.f32 %v834_v50, %v833_v49  ;;  %1440 = vmatpush3.bf16.msra.mxu0 %v739_v37  ;;  %v1935_v38 = vadd.f32 %v1815_v60, %v80_v42 }
 0x1f1   :  { %v674_v52 = vrot.slane %v673_v59, 1  ;;  %v836_v54 = vrot.slane %v835_v51, 4  ;;  %vm950_vm3 = vcmp.ge.f32.partialorder %v1935_v38, 0.0 }
 0x1f2   :  { %1424 = vmatmul.mubr.msk.bf16.gmra.mrb[20].mxu1 %vm211_vm1, %v1783_v45  ;;  %1442 = vmatmul.mubr.msk.bf16.vlgmr.msra.gmra.mrb[24].mxu0 %vm211_vm1, %v1755_v19 }
 0x1f3   :  { %v675_v55 = vadd.f32 %v674_v52, %v673_v59  ;;  %v837_v56 = vadd.f32 %v836_v54, %v835_v51  ;;  %1445 = vmatprep.mubr.msk.bf16.mxu0 %vm211_vm1, %v1762_v22  ;;  %1427 = vmatprep.mubr.msk.bf16.mxu1 %vm211_vm1, %v1789_v48 }
 0x1f5   :  { %v965_v57 = vadd.f32 %v1808_v58, %v675_v55  ;;  %v838_v61 = vrot.slane %v837_v56, 2 }
 0x1f7   :  { %v839_v62 = vadd.f32 %v838_v61, %v837_v56  ;;  %v1942_v55 = vadd.f32 %v965_v57, %v80_v42 }
 0x1f9   :  { %v840_v63 = vrot.slane %v839_v62, 1  ;;  %vm971_vm4 = vcmp.ge.f32.partialorder %v1942_v55, 0.0 }
 0x1fa   :  { %1446 = vmatmul.mubr.msk.bf16.gmra.mrb[28].mxu0 %vm211_vm1, %v1783_v45  ;;  %1428 = vmatmul.mubr.msk.bf16.gmra.mrb[24].mxu1 %vm211_vm1, %v1802_v53 }
 0x1fb   :  { %v841_v19 = vadd.f32 %v840_v63, %v839_v62  ;;  %1449 = vmatprep.mubr.msk.bf16.mxu0 %vm211_vm1, %v1789_v48  ;;  %1457 = vmatprep.mubr.msk.bf16.mxu1 %vm211_vm1, %v1489_v0  ;;  %v890_v48 = vrot.slane %v1865_v12, 4  ;;  %v946_v0 = vand.u32 2147483647, %v1935_v38 }
 0x1fd   :  { %v990_v22 = vadd.f32 %v1808_v58, %v841_v19  ;;  %v891_v31 = vadd.f32 %v890_v48, %v1865_v12 }
 0x1ff   :  { %v892_v12 = vrot.slane %v891_v31, 2  ;;  %v1947_v19 = vadd.f32 %v990_v22, %v80_v42 }
 0x201   :  { %v893_v43 = vadd.f32 %v892_v12, %v891_v31  ;;  %v992_v57 = vand.u32 2147483647, %v1947_v19  ;;  %vm996_vm5 = vcmp.ge.f32.partialorder %v1947_v19, 0.0 }
 0x202   :  { %1450 = vmatmul.mubr.msk.bf16.gmra.mrb[32].mxu0 %vm211_vm1, %v1802_v53 }
 0x203   :  { %v894_v54 = vrot.slane %v893_v43, 1 }
 0x2bd   :  { %v1421_v4 = vpop.f32.mrb[16].mxu1 }
 0x2be   :  { %v898_v45 = vmul.f32 %v1421_v4, %v1837_v16  ;;  %v608_v6 = vpop.f32.mrb[17].mxu1 }
 0x2bf   :  { %v896_v7 = vmul.f32 %v608_v6, %v1841_v23  ;;  %v1422_v9 = vpop.f32.mrb[18].mxu1  ;;  %v895_v6 = vadd.f32 %v894_v54, %v893_v43 }
 0x2c0   :  { %v899_v58 = vmul.f32 %v1422_v9, %v1845_v28  ;;  %v611_v3 = vpop.f32.mrb[19].mxu1  ;;  %v903_v14 = vsel %vm359_vm2, %v898_v45, 0.0 }
 0x2c1   :  { %v897_v53 = vmul.f32 %v611_v3, %v1849_v39  ;;  %v900_v10 = vsel %vm359_vm2, %v896_v7, 0.0  ;;  %v967_v7 = vand.u32 2147483647, %v1942_v55  ;;  %v947_v3 = vsub.f32 0.0, %v946_v0 }
 0x2c2   :  { %v905_v26 = vsel %vm359_vm2, %v899_v58, 0.0 }
 0x2c3   :  { %v901_v11 = vsel %vm359_vm2, %v897_v53, 0.0 }
 0x2c4   :  { %v902_v13 = vadd.f32 %v901_v11, %v900_v10 }
 0x2c5   :  { %v1914_v15 = vpop.f32.mrb[20].mxu1  ;;  %v1443_v34 = vpop.f32.mrb[24].mxu0 }
 0x2c6   :  { %v904_v17 = vadd.f32 %v903_v14, %v902_v13  ;;  %v915_v18 = vmul.f32 %v1443_v34, %v1837_v16  ;;  %v1917_v20 = vpop.f32.mrb[21].mxu1  ;;  %v774_v25 = vpop.f32.mrb[25].mxu0  ;;  %v968_v13 = vsub.f32 0.0, %v967_v7  ;;  %v993_v34 = vsub.f32 0.0, %v992_v57 }
 0x2c7   :  { %v913_v32 = vmul.f32 %v774_v25, %v1841_v23  ;;  %v1921_v27 = vpop.f32.mrb[22].mxu1  ;;  %v1444_v29 = vpop.f32.mrb[26].mxu0 }
 0x2c8   :  { %v906_v30 = vadd.f32 %v905_v26, %v904_v17  ;;  %v1923_v37 = vpop.f32.mrb[23].mxu1  ;;  %v777_v36 = vpop.f32.mrb[27].mxu0  ;;  %v916_v40 = vmul.f32 %v1444_v29, %v1845_v28  ;;  %v948_v17 = vmul.f32 1.442695, %v947_v3  ;;  %v969_v25 = vmul.f32 1.442695, %v968_v13 }
 0x2c9   :  { %v914_v16 = vmul.f32 %v777_v36, %v1849_v39  ;;  %v917_v23 = vsel %vm359_vm2, %v913_v32, 0.0  ;;  %v920_v39 = vsel %vm359_vm2, %v915_v18, 0.0  ;;  %v994_v32 = vmul.f32 1.442695, %v993_v34 }
 0x2ca   :  { %v907_v41 = vrot.slane %v906_v30, 4  ;;  %v922_v61 = vsel %vm359_vm2, %v916_v40, 0.0  ;;  %1493 = vpow2.f32 %v948_v17 }
 0x2cb   :  { %v918_v46 = vsel %vm359_vm2, %v914_v16, 0.0  ;;  %1495 = vpow2.f32 %v969_v25 }
 0x2cc   :  { %v908_v33 = vadd.f32 %v907_v41, %v906_v30  ;;  %v919_v35 = vadd.f32 %v918_v46, %v917_v23  ;;  %1497 = vpow2.f32 %v994_v32 }
 0x2cd   :  { %v1932_v47 = vpop.f32.mrb[28].mxu0  ;;  %v1429_v44 = vpop.f32.mrb[24].mxu1 }
 0x2ce   :  { %v909_v28 = vrot.slane %v908_v33, 2  ;;  %v1938_v49 = vpop.f32.mrb[29].mxu0  ;;  %v640_v50 = vpop.f32.mrb[25].mxu1  ;;  %v921_v59 = vadd.f32 %v920_v39, %v919_v35 }
 0x2cf   :  { %v1940_v51 = vpop.f32.mrb[30].mxu0  ;;  %v1430_v52 = vpop.f32.mrb[26].mxu1 }
 0x2d0   :  { %v910_v56 = vadd.f32 %v909_v28, %v908_v33  ;;  %v1945_v62 = vpop.f32.mrb[31].mxu0  ;;  %v642_v60 = vpop.f32.mrb[27].mxu1  ;;  %v923_v63 = vadd.f32 %v922_v61, %v921_v59  ;;  %v957_v52 = vlaneseq }
 0x2d1   :  { %v310_v59 = vpop.permute.xlu0 %309 }
 0x2d2   :  { %v911_v4 = vrot.slane %v910_v56, 1  ;;  %v924_v45 = vrot.slane %v923_v63, 4  ;;  %v1952_v61 = vshrl.u32 %v957_v52, 7 }
 0x2d4   :  { %v912_v9 = vadd.f32 %v911_v4, %v910_v56  ;;  %v925_v48 = vadd.f32 %v924_v45, %v923_v63  ;;  %v1494_v42 = vpop.eup %1493  ;;  %v315_v56 = vpop.permute.xlu1 %314  ;;  %v327_v4 = vadd.f32 %v310_v59, %v1831_v5  ;;  %v980_v57 = vsub.s32 2, %v1952_v61 }
 0x2d5   :  { %v1451_v58 = vpop.f32.mrb[32].mxu0  ;;  %v1496_v43 = vpop.eup %1495  ;;  %v952_v23 = vadd.f32 1.0, %v1494_v42  ;;  %v951_v7 = vsel %vm950_vm3, 1.0, %v1494_v42  ;;  %v328_v38 = vadd.f32 %v315_v56, %v1835_v8  ;;  %v652_v19 = vadd.f32 %v1923_v37, %v315_v56 }
 0x2d6   :  { %v930_v53 = vmax.f32 %v895_v6, %v912_v9  ;;  %v806_v10 = vpop.f32.mrb[33].mxu0  ;;  %v926_v11 = vrot.slane %v925_v48, 2  ;;  %v1498_v33 = vpop.eup %1497  ;;  %v973_v46 = vadd.f32 1.0, %v1496_v43  ;;  %v1005_v58 = vsub.s32 3, %v1952_v61 }
 0x2d7   :  { %v1452_v31 = vpop.f32.mrb[34].mxu0  ;;  %v998_v35 = vadd.f32 1.0, %v1498_v33  ;;  %v320_v60 = vpop.permute.xlu0 %319  ;;  %v972_v10 = vsel %vm971_vm4, 1.0, %v1496_v43  ;;  %v331_v5 = vmax.f32 %v327_v4, 0.0  ;;  %v818_v32 = vadd.f32 %v1945_v62, %v315_v56 }
 0x2d8   :  { %v808_v22 = vpop.f32.mrb[35].mxu0  ;;  %v927_v14 = vadd.f32 %v926_v11, %v925_v48  ;;  %v329_v0 = vadd.f32 %v1829_v1, %v320_v60  ;;  %v325_v48 = vpop.permute.xlu1 %324  ;;  %v997_v31 = vsel %vm996_vm5, 1.0, %v1498_v33  ;;  %v819_v17 = vadd.f32 %v1932_v47, %v320_v60 }
 0x2d9   :  { %v330_v1 = vadd.f32 %v1833_v2, %v325_v48  ;;  %v653_v22 = vadd.f32 %v1914_v15, %v320_v60  ;;  %v654_v34 = vadd.f32 %v1921_v27, %v325_v48  ;;  %v820_v8 = vadd.f32 %v1940_v51, %v325_v48 }
 0x2da   :  { %v928_v18 = vrot.slane %v927_v14, 1  ;;  %v823_v47 = vmax.f32 %v819_v17, 0.0  ;;  %v656_v42 = vmax.f32 %v652_v19, 0.0  ;;  %v822_v51 = vmax.f32 %v818_v32, 0.0 }
 0x2db   :  { %v657_v27 = vmax.f32 %v653_v22, 0.0  ;;  %v824_v43 = vmax.f32 %v820_v8, 0.0 }
 0x2dc   :  { %v929_v26 = vadd.f32 %v928_v18, %v927_v14  ;;  %v651_v14 = vadd.f32 %v1917_v20, %v310_v59 }
 0x2de   :  { %v931_v29 = vmax.f32 %v930_v53, %v929_v26  ;;  %v333_v53 = vmax.f32 %v329_v0, 0.0 }
 0x2e0   :  { %v932_v12 = vsub.f32 %v895_v6, %v931_v29  ;;  %v935_v30 = vsub.f32 %v912_v9, %v931_v29  ;;  %v938_v36 = vsub.f32 %v929_v26, %v931_v29  ;;  %v959_v6 = vsub.s32 0, %v1952_v61 }
 0x2e1   :  { %v817_v26 = vadd.f32 %v1938_v49, %v310_v59  ;;  %v334_v29 = vmax.f32 %v330_v1, 0.0  ;;  %v1162_v1 = vpop.permute.xlu0 %1161 }
 0x2e2   :  { %v933_v40 = vmul.f32 1.442695, %v932_v12  ;;  %v936_v41 = vmul.f32 1.442695, %v935_v30  ;;  %v939_v16 = vmul.f32 1.442695, %v938_v36 }
 0x2e3   :  { %v332_v30 = vmax.f32 %v328_v38, 0.0  ;;  %v655_v36 = vmax.f32 %v651_v14, 0.0  ;;  %v821_v49 = vmax.f32 %v817_v26, 0.0 }
 0x2e4   :  { %1499 = vpow2.f32 %v933_v40  ;;  %v658_v40 = vmax.f32 %v654_v34, 0.0 }
 0x2e5   :  { %1501 = vpow2.f32 %v936_v41 }
 0x2e6   :  { %1503 = vpow2.f32 %v939_v16 }
 0x2e7   :  { %1505 = vrcp.f32 %v952_v23 }
 0x2e8   :  { %1507 = vrcp.f32 %v973_v46 }
 0x2e9   :  { %1509 = vrcp.f32 %v998_v35 }
 0x2ee   :  { %v1500_v44 = vpop.eup %1499 }
 0x2ef   :  { %v1502_v28 = vpop.eup %1501 }
 0x2f0   :  { %v941_v39 = vadd.f32 %v1502_v28, %v1500_v44  ;;  %v1504_v50 = vpop.eup %1503 }
 0x2f1   :  { %v1506_v63 = vpop.eup %1505 }
 0x2f2   :  { %v942_v54 = vadd.f32 %v1504_v50, %v941_v39  ;;  %v1508_v45 = vpop.eup %1507  ;;  %v954_v3 = vmul.f32 %v1506_v63, %v951_v7 }
 0x2f3   :  { %v1510_v9 = vpop.eup %1509  ;;  %v975_v11 = vmul.f32 %v1508_v45, %v972_v10  ;;  %v1167_v10 = vpop.permute.xlu1 %1166 }
 0x2f4   :  { %1511 = vrcp.f32 %v942_v54  ;;  %v1000_v55 = vmul.f32 %v1510_v9, %v997_v31 }
 0x2f7   :  { %v1177_v38 = vpop.permute.xlu1 %1176 }
 0x2fb   :  { %v1199_v34 = vpop.permute.xlu1 %1198 }
 0x2fe   :  { %v1512_v13 = vpop.eup %1511 }
 0x2ff   :  { %v955_v18 = vmul.f32 %v1512_v13, %v1500_v44  ;;  %v976_v2 = vmul.f32 %v1512_v13, %v1502_v28  ;;  %v1001_v25 = vmul.f32 %v1512_v13, %v1504_v50 }
 0x301   :  { %v956_v15 = vmul.f32 %v955_v18, %v954_v3  ;;  %v977_v12 = vmul.f32 %v976_v2, %v975_v11  ;;  %v1002_v20 = vmul.f32 %v1001_v25, %v1000_v55  ;;  %v1491_v3 = vld [vmem:[%s2016_s8] sm:$0xff]  }
 0x303   :  { %v960_v41 = vrot.slane %v956_v15, %v959_v6  ;;  %v981_v16 = vrot.slane %v977_v12, %v980_v57  ;;  %v1006_v37 = vrot.slane %v1002_v20, %v1005_v58  ;;  %v1490_v58 = vld [vmem:[%s2017_s9 + $0x8] sm:$0xff]   ;;  %v1209_v15 = vpop.permute.xlu1 %1208 }
 0x305   :  { %v963_v33 = vmul.f32 %v960_v41, %v333_v53  ;;  %v984_v62 = vmul.f32 %v981_v16, %v657_v27  ;;  %v1009_v23 = vmul.f32 %v1006_v37, %v823_v47  ;;  %v961_v46 = vmul.f32 %v960_v41, %v331_v5  ;;  %v1492_v53 = vld [vmem:[%s2016_s8 + $0x8] sm:$0xff]   ;;  %v1172_v5 = vpop.permute.xlu0 %1171  ;;  %s1538_s8 = smov [#allocation3]  }
 0x306   :  { %v982_v35 = vmul.f32 %v981_v16, %v655_v36  ;;  %v1007_v44 = vmul.f32 %v1006_v37, %v821_v49  ;;  %v964_v28 = vmul.f32 %v960_v41, %v334_v29  ;;  %v985_v39 = vmul.f32 %v981_v16, %v658_v40  ;;  %s1247_s9 = sshll.u32 %s1538_s8, 4  ;;  %s1248_s9 = int_to_ptr.vmem [resolvable:$true] %s1247_s9 }
 0x307   :  { %v988_v50 = vadd.f32 %v984_v62, %v963_v33  ;;  %v1010_v59 = vmul.f32 %v1006_v37, %v824_v43  ;;  %v962_v52 = vmul.f32 %v960_v41, %v332_v30  ;;  %v983_v54 = vmul.f32 %v981_v16, %v656_v42  ;;  %s1513_s20 = scalar_lea.vmem %s1248_s9, 16  ;;  %s1517_s2 = scalar_lea.vmem %s1248_s9, 32 }
 0x308   :  { %v986_v56 = vadd.f32 %v982_v35, %v961_v46  ;;  %v989_v60 = vadd.f32 %v985_v39, %v964_v28  ;;  %v1008_v63 = vmul.f32 %v1006_v37, %v822_v51  ;;  %p1514_p0 = scmp.ne.s32.totalorder %s1248_s9, %s1513_s20  ;;  %p1518_p1 = scmp.lt.s32.totalorder %s1248_s9, %s1248_s9 }
 0x309   :  { %v1013_v0 = vadd.f32 %v1009_v23, %v988_v50  ;;  %v987_v4 = vadd.f32 %v983_v54, %v962_v52  ;;  %v1194_v31 = vpop.permute.xlu0 %1193  ;;  %p1519_p2 = scmp.lt.s32.totalorder %s1517_s2, %s1513_s20 }
 0x30a   :  { %v1011_v45 = vadd.f32 %v1007_v44, %v986_v56  ;;  %v1014_v7 = vadd.f32 %v1010_v59, %v989_v60 }
 0x30b   :  { %v1012_v9 = vadd.f32 %v1008_v63, %v987_v4  ;;  %p1520_p3 = por %p1519_p2, %p1518_p1 }
 0x30c   :  { %v1024_v48 = vpack.c.bf16 %v1014_v7, %v1013_v0 }
 0x30d   :  { %v1023_v57 = vpack.c.bf16 %v1012_v9, %v1011_v45  ;;  %v1204_v8 = vpop.permute.xlu0 %1203  ;;  %p1521_p4 = pnand %p1520_p3, %p1514_p0 }
 0x30f   :  { %1453 = vmatprep.subr.bf16.mxu1 %v1023_v57 }
 0x310   :  { %1454 = vmatpush3.bf16.msra.mxu1 %v1023_v57 }
 0x311   :  { %1455 = vmatprep.subr.bf16.mxu1 %v1024_v48  ;;  %v1232_v43 = vpop.permute.xlu0 %1231 }
 0x312   :  { %v1237_v33 = vrot.slane %v1232_v43, %v959_v6 }
 0x314   :  { %1456 = vmatpush3.bf16.msra.mxu1 %v1024_v48 }
 0x315   :  { %1461 = vmatprep.subr.bf16.mxu1 %v1764_v24 }
 0x317   :  { %1458 = vmatmul.mubr.msk.bf16.vlgmr.msra.gmra.mrb[28].mxu1 %vm211_vm1, %v1490_v58 }
 0x318   :  { %1462 = vmatpush3.bf16.msra.mxu1 %v1764_v24  ;;  %1465 = vmatprep.mubr.msk.bf16.mxu1 %vm211_vm1, %v1491_v3 }
 0x319   :  { %1463 = vmatprep.subr.bf16.mxu1 %v1757_v21 }
 0x31c   :  { %1464 = vmatpush3.bf16.msra.mxu1 %v1757_v21 }
 0x323   :  { %1466 = vmatmul.mubr.msk.bf16.vlgmr.msra.gmra.mrb[28].mxu1 %vm211_vm1, %v1492_v53 }
 0x3f6   :  { %v1467_v11 = vpop.f32.mrb[28].mxu1 }
 0x3f7   :  { %v1181_v13 = vadd.f32 %v1467_v11, %v1172_v5  ;;  %v1140_v24 = vpop.f32.mrb[29].mxu1 }
 0x3f8   :  { %v1179_v22 = vadd.f32 %v1162_v1, %v1140_v24  ;;  %v1468_v14 = vpop.f32.mrb[30].mxu1 }
 0x3f9   :  { %v1182_v55 = vadd.f32 %v1468_v14, %v1177_v38  ;;  %v1143_v17 = vpop.f32.mrb[31].mxu1  ;;  %v1185_v21 = vmax.f32 %v1181_v13, 0.0 }
 0x3fa   :  { %v1183_v18 = vmax.f32 %v1179_v22, 0.0  ;;  %v1180_v2 = vadd.f32 %v1167_v10, %v1143_v17 }
 0x3fb   :  { %v1186_v19 = vmax.f32 %v1182_v55, 0.0  ;;  %v1213_v32 = vmul.f32 %v1204_v8, %v1185_v21 }
 0x3fc   :  { %v1211_v25 = vmul.f32 %v1194_v31, %v1183_v18  ;;  %v1184_v26 = vmax.f32 %v1180_v2, 0.0 }
 0x3fd   :  { %v1214_v20 = vmul.f32 %v1209_v15, %v1186_v19  ;;  %v1218_v36 = vsel %vm359_vm2, %v1213_v32, 0.0 }
 0x3fe   :  { %v1212_v29 = vmul.f32 %v1199_v34, %v1184_v26  ;;  %v1215_v12 = vsel %vm359_vm2, %v1211_v25, 0.0 }
 0x3ff   :  { %v1220_v47 = vsel %vm359_vm2, %v1214_v20, 0.0 }
 0x400   :  { %v1216_v30 = vsel %vm359_vm2, %v1212_v29, 0.0 }
 0x401   :  { %v1217_v27 = vadd.f32 %v1216_v30, %v1215_v12 }
 0x403   :  { %v1219_v40 = vadd.f32 %v1218_v36, %v1217_v27 }
 0x405   :  { %v1221_v41 = vadd.f32 %v1220_v47, %v1219_v40 }
 0x407   :  { %v1222_v16 = vrot.slane %v1221_v41, 4 }
 0x409   :  { %v1223_v37 = vadd.f32 %v1222_v16, %v1221_v41 }
 0x40b   :  { %v1224_v42 = vrot.slane %v1223_v37, 2 }
 0x40d   :  { %v1225_v49 = vadd.f32 %v1224_v42, %v1223_v37 }
 0x40f   :  { %v1226_v51 = vrot.slane %v1225_v49, 1 }
 0x411   :  { %v1227_v62 = vadd.f32 %v1226_v51, %v1225_v49 }
 0x413   :  { %v1238_v23 = vadd.f32 %v1237_v33, %v1227_v62 }
 0x415   :  { %1240 = vst.msk [vmem:[#allocation3] sm:$0x1] %vm1239_vm6, %v1238_v23 }
 0x416   :  { %1524 = shalt.err (!%p1521_p4)
}
 0x417   :  { %s1525_s11 = scalar_lea.hbm %s2021_s13, 16 }
 0x418   :  { %p1526_p5 = scmp.ne.s32.totalorder %s2021_s13, %s1525_s11  ;;  %p1529_p6 = scmp.lt.u32.totalorder %s1525_s11, %s2021_s13 }
 0x41a   :  { %p1531_p7 = pnand %p1529_p6, %p1526_p5 }
 0x41c   :  { %1534 = shalt.err (!%p1531_p7)
}
 0x41d   :  { %1250 = dma.vmem_to_hbm [thread:$0]  %s1248_s9, 16, %s2021_s13, [#allocation4]  }
 0x41e   :  { %1535 = dma.done.wait [#allocation4], 16  }
 0x41f   :  { %1536 = vsyncadd [#allocation4], 4294967280 }
 0x420   :  { %1254 = vsyncpa [#allocation4], 1 }

</bundles_post_ra>
